<compile_context>
chip_gen: v5e
topology: v5e:2x2
jax: 0.10.0
libtpu: 0.0.40
codegen_flags: <defaults>
</compile_context>

<pallas_src>
import jax
import jax.numpy as jnp
from jax.experimental import pallas as pl
from jax.experimental.pallas import tpu as pltpu


# ---------------------------------------------------------------------------
# Kernel 1: all layers resident in VMEM, single grid step, unrolled layers.
# ---------------------------------------------------------------------------
def _highway_resident_kernel(x_ref, w_ref, b_ref, o_ref):
    """w_ref: (L, D, 2D) fused [Wt | Wg] ; b_ref: (L, 1, 2D) fused [bt | bg]."""
    num_layers = w_ref.shape[0]
    d = x_ref.shape[-1]
    h = x_ref[...].astype(jnp.float32)
    for layer in range(num_layers):          # static trip count -> unrolled
        z = jnp.dot(h.astype(w_ref.dtype), w_ref[layer],
                    preferred_element_type=jnp.float32)
        z = z + b_ref[layer]
        t = jnp.maximum(z[:, :d], 0.0)       # transform branch: ReLU
        g = jax.nn.sigmoid(z[:, d:])         # gate branch: sigmoid
        h = h + g * (t - h)                  # == g*t + (1-g)*h, fewer VPU ops
    o_ref[...] = h.astype(o_ref.dtype)


# ---------------------------------------------------------------------------
# Kernel 2: grid = (batch_tiles, layers); per-layer fused weights streamed.
# ---------------------------------------------------------------------------
def _highway_stream_kernel(x_ref, w_ref, b_ref, o_ref, h_ref):
    layer = pl.program_id(1)
    d = x_ref.shape[-1]

    @pl.when(layer == 0)
    def _():
        h_ref[...] = x_ref[...].astype(jnp.float32)

    h = h_ref[...]
    z = jnp.dot(h.astype(w_ref.dtype), w_ref[0],
                preferred_element_type=jnp.float32)
    z = z + b_ref[0]
    t = jnp.maximum(z[:, :d], 0.0)
    g = jax.nn.sigmoid(z[:, d:])
    h_ref[...] = h + g * (t - h)

    @pl.when(layer == pl.num_programs(1) - 1)
    def _():
        o_ref[...] = h_ref[...].astype(o_ref.dtype)


# ---------------------------------------------------------------------------
# Wrapper
# ---------------------------------------------------------------------------
def highway_forward(x, wt, bt, wg, bg, *, weight_dtype=jnp.bfloat16,
                    path=None, batch_tile=None,
                    resident_weight_budget=8 * 1024 * 1024):
    """x: (B, D); wt/wg: (L, D, D) stored as (in, out); bt/bg: (L, 1, D)."""
    num_layers, d, _ = wt.shape
    b_sz = x.shape[0]

    # Fuse transform + gate into one (D, 2D) projection per layer.
    w = jnp.concatenate([wt, wg], axis=-1).astype(weight_dtype)    # (L, D, 2D)
    bias = jnp.concatenate([bt, bg], axis=-1).astype(jnp.float32)  # (L, 1, 2D)

    w_itemsize = jnp.dtype(weight_dtype).itemsize
    total_weight_bytes = int(w.size) * w_itemsize
    if path is None:
        path = "resident" if total_weight_bytes <= resident_weight_budget \
            else "stream"

    flops = int(4 * b_sz * d * d * num_layers)              # fused matmuls
    transcendentals = int(b_sz * d * num_layers)             # sigmoid exp
    io_bytes = int(2 * x.size * x.dtype.itemsize + total_weight_bytes
                   + bias.size * bias.dtype.itemsize)
    cost = pl.CostEstimate(flops=flops, transcendentals=transcendentals,
                           bytes_accessed=io_bytes)

    if path == "resident":
        return pl.pallas_call(
            _highway_resident_kernel,
            out_shape=jax.ShapeDtypeStruct((b_sz, d), x.dtype),
            grid_spec=pltpu.PrefetchScalarGridSpec(
                num_scalar_prefetch=0,
                grid=(1,),
                in_specs=[
                    pl.BlockSpec((b_sz, d), lambda i: (0, 0)),
                    pl.BlockSpec((num_layers, d, 2 * d), lambda i: (0, 0, 0)),
                    pl.BlockSpec((num_layers, 1, 2 * d), lambda i: (0, 0, 0)),
                ],
                out_specs=pl.BlockSpec((b_sz, d), lambda i: (0, 0)),
            ),
            compiler_params=pltpu.CompilerParams(
                dimension_semantics=("arbitrary",)),
            cost_estimate=cost,
        )(x, w, bias)

    # ---------------- streaming (pipelined) path ----------------
    if batch_tile is None:
        batch_tile = 128 if (b_sz > 128 and b_sz % 128 == 0) else b_sz
    n_btiles = b_sz // batch_tile

    # VMEM budget: double-buffered per-layer fused weight/bias blocks plus
    # x / out blocks and the f32 activation scratch.
    per_step = (d * 2 * d * w_itemsize + 2 * d * 4
                + 2 * batch_tile * d * x.dtype.itemsize)
    need = 2 * per_step + batch_tile * d * 4 + (1 << 20)
    # For D so large that a double-buffered (D, 2D) bf16 block no longer fits
    # VMEM (v7x: 64 MiB physical) the projection would additionally need a
    # K/N tiling grid axis; not required for the shapes exercised here.
    if need < 12 * 1024 * 1024:
        cparams = pltpu.CompilerParams(
            dimension_semantics=("parallel", "arbitrary"))
    else:
        cparams = pltpu.CompilerParams(
            dimension_semantics=("parallel", "arbitrary"),
            vmem_limit_bytes=int(min(need, 56 * 1024 * 1024)))

    return pl.pallas_call(
        _highway_stream_kernel,
        out_shape=jax.ShapeDtypeStruct((b_sz, d), x.dtype),
        grid_spec=pltpu.PrefetchScalarGridSpec(
            num_scalar_prefetch=0,
            grid=(n_btiles, num_layers),
            in_specs=[
                pl.BlockSpec((batch_tile, d), lambda bi, l: (bi, 0)),
                pl.BlockSpec((1, d, 2 * d), lambda bi, l: (l, 0, 0)),
                pl.BlockSpec((1, 1, 2 * d), lambda bi, l: (l, 0, 0)),
            ],
            out_specs=pl.BlockSpec((batch_tile, d), lambda bi, l: (bi, 0)),
            scratch_shapes=[pltpu.VMEM((batch_tile, d), jnp.float32)],
        ),
        compiler_params=cparams,
        cost_estimate=cost,
    )(x, w, bias)


def highway_reference(x, wt, bt, wg, bg, *, weight_dtype=jnp.float32):
    """Pure-JAX reference mirroring the PyTorch forward.

    With weight_dtype=bfloat16 it models exactly what the kernel computes
    (bf16 weight/activation storage, exact products, f32 accumulation).
    """
    h = x.astype(jnp.float32)
    for layer in range(wt.shape[0]):
        wt_l = wt[layer].astype(weight_dtype).astype(jnp.float32)
        wg_l = wg[layer].astype(weight_dtype).astype(jnp.float32)
        hb = h.astype(weight_dtype).astype(jnp.float32)
        t = jax.nn.relu(hb @ wt_l + bt[layer])
        g = jax.nn.sigmoid(hb @ wg_l + bg[layer])
        h = g * t + (1.0 - g) * h
    return h.astype(x.dtype)


if __name__ == "__main__":
    # Small shapes implied by the module: x is (batch, input_dim).
    batch = 8
    input_dim = 32
    num_layers = 3

    key = jax.random.PRNGKey(0)
    kx, kwt, kbt, kwg, kbg = jax.random.split(key, 5)

    # PyTorch-Linear-style init scale: U(-1/sqrt(D), 1/sqrt(D)), deterministic.
    bound = 1.0 / jnp.sqrt(jnp.float32(input_dim))
    x = jax.random.normal(kx, (batch, input_dim), dtype=jnp.float32)
    wt = jax.random.uniform(kwt, (num_layers, input_dim, input_dim),
                            minval=-bound, maxval=bound, dtype=jnp.float32)
    bt = jax.random.uniform(kbt, (num_layers, 1, input_dim),
                            minval=-bound, maxval=bound, dtype=jnp.float32)
    wg = jax.random.uniform(kwg, (num_layers, input_dim, input_dim),
                            minval=-bound, maxval=bound, dtype=jnp.float32)
    bg = jax.random.uniform(kbg, (num_layers, 1, input_dim),
                            minval=-bound, maxval=bound, dtype=jnp.float32)

    # Auto-selected path for these tiny shapes: single-step resident kernel.
    out = jax.block_until_ready(highway_forward(x, wt, bt, wg, bg))
    # Also exercise the pipelined streaming path (what large B / D would use).
    out_stream = jax.block_until_ready(
        highway_forward(x, wt, bt, wg, bg, path="stream"))

    ref_bf16 = highway_reference(x, wt, bt, wg, bg, weight_dtype=jnp.bfloat16)
    ref_f32 = highway_reference(x, wt, bt, wg, bg, weight_dtype=jnp.float32)

    assert out.shape == (batch, input_dim)
    assert jnp.allclose(out, ref_bf16, atol=2e-4, rtol=2e-4), \
        "resident kernel mismatch vs bf16-weight reference"
    assert jnp.allclose(out_stream, ref_bf16, atol=2e-4, rtol=2e-4), \
        "streaming kernel mismatch vs bf16-weight reference"
    assert jnp.allclose(out, ref_f32, atol=5e-2, rtol=5e-2), \
        "kernel drifted too far from full-f32 reference"

    print("KERNEL_OK")
</pallas_src>

<mosaic_0001>
module attributes {stable_mosaic.version = 11 : i64} {
  func.func @_highway_resident_kernel(%arg0: i32, %arg1: memref<8x32xf32, #tpu.memory_space<vmem>>, %arg2: memref<3x32x64xbf16, #tpu.memory_space<vmem>>, %arg3: memref<3x1x64xf32, #tpu.memory_space<vmem>>, %arg4: memref<8x32xf32, #tpu.memory_space<vmem>>) attributes {dimension_semantics = [#tpu.dimension_semantics<arbitrary>], iteration_bounds = array<i64: 1>, scalar_prefetch = 0 : i64, scratch_operands = 0 : i64, tpu.core_type = #tpu.core_type<tc>, window_params = [{pipeline_mode = #tpu.pipeline_mode<synchronous>, transform_indices = @transform_0, window_bounds = array<i64: 8, 32>}, {pipeline_mode = #tpu.pipeline_mode<synchronous>, transform_indices = @transform_1, window_bounds = array<i64: 3, 32, 64>}, {pipeline_mode = #tpu.pipeline_mode<synchronous>, transform_indices = @transform_2, window_bounds = array<i64: 3, 1, 64>}, {pipeline_mode = #tpu.pipeline_mode<synchronous>, transform_indices = @transform_3, window_bounds = array<i64: 8, 32>}]} {
    %c0 = arith.constant 0 : index
    %c0_0 = arith.constant 0 : index
    %0 = vector.load %arg1[%c0, %c0_0] : memref<8x32xf32, #tpu.memory_space<vmem>>, vector<8x32xf32>
    %1 = arith.truncf %0 : vector<8x32xf32> to vector<8x32xbf16>
    %c0_1 = arith.constant 0 : index
    %c0_2 = arith.constant 0 : index
    %c0_3 = arith.constant 0 : index
    %2 = vector.load %arg2[%c0_1, %c0_2, %c0_3] : memref<3x32x64xbf16, #tpu.memory_space<vmem>>, vector<1x32x64xbf16>
    %3 = vector.shape_cast %2 : vector<1x32x64xbf16> to vector<32x64xbf16>
    %cst = arith.constant dense<0.000000e+00> : vector<8x64xf32>
    %4 = tpu.matmul %1, %3, %cst {dimension_numbers = #tpu.dot_dimension_numbers<[1], [0], [0], [1], [0, 0, 1, 1], [], []>} : vector<8x32xbf16>, vector<32x64xbf16>, vector<8x64xf32> -> vector<8x64xf32>
    %c0_4 = arith.constant 0 : index
    %c0_5 = arith.constant 0 : index
    %c0_6 = arith.constant 0 : index
    %5 = vector.load %arg3[%c0_4, %c0_5, %c0_6] : memref<3x1x64xf32, #tpu.memory_space<vmem>>, vector<1x1x64xf32>
    %6 = vector.shape_cast %5 : vector<1x1x64xf32> to vector<1x64xf32>
    %7 = vector.broadcast %6 : vector<1x64xf32> to vector<8x64xf32>
    %8 = arith.addf %4, %7 : vector<8x64xf32>
    %9 = vector.extract_strided_slice %8 {offsets = [0, 0], sizes = [8, 32], strides = [1, 1]} : vector<8x64xf32> to vector<8x32xf32>
    %cst_7 = arith.constant 0.000000e+00 : f32
    %10 = vector.broadcast %cst_7 : f32 to vector<8x32xf32>
    %11 = arith.maximumf %9, %10 : vector<8x32xf32>
    %12 = vector.extract_strided_slice %8 {offsets = [0, 32], sizes = [8, 32], strides = [1, 1]} : vector<8x64xf32> to vector<8x32xf32>
    %13 = arith.negf %12 : vector<8x32xf32>
    %14 = math.exp %13 : vector<8x32xf32>
    %cst_8 = arith.constant 1.000000e+00 : f32
    %15 = vector.broadcast %cst_8 : f32 to vector<8x32xf32>
    %16 = arith.addf %15, %14 : vector<8x32xf32>
    %17 = arith.divf %15, %16 : vector<8x32xf32>
    %18 = arith.subf %11, %0 : vector<8x32xf32>
    %19 = arith.mulf %17, %18 : vector<8x32xf32>
    %20 = arith.addf %0, %19 : vector<8x32xf32>
    %21 = arith.truncf %20 : vector<8x32xf32> to vector<8x32xbf16>
    %c1 = arith.constant 1 : index
    %c0_9 = arith.constant 0 : index
    %c0_10 = arith.constant 0 : index
    %22 = vector.load %arg2[%c1, %c0_9, %c0_10] : memref<3x32x64xbf16, #tpu.memory_space<vmem>>, vector<1x32x64xbf16>
    %23 = vector.shape_cast %22 : vector<1x32x64xbf16> to vector<32x64xbf16>
    %cst_11 = arith.constant dense<0.000000e+00> : vector<8x64xf32>
    %24 = tpu.matmul %21, %23, %cst_11 {dimension_numbers = #tpu.dot_dimension_numbers<[1], [0], [0], [1], [0, 0, 1, 1], [], []>} : vector<8x32xbf16>, vector<32x64xbf16>, vector<8x64xf32> -> vector<8x64xf32>
    %c1_12 = arith.constant 1 : index
    %c0_13 = arith.constant 0 : index
    %c0_14 = arith.constant 0 : index
    %25 = vector.load %arg3[%c1_12, %c0_13, %c0_14] : memref<3x1x64xf32, #tpu.memory_space<vmem>>, vector<1x1x64xf32>
    %26 = vector.shape_cast %25 : vector<1x1x64xf32> to vector<1x64xf32>
    %27 = vector.broadcast %26 : vector<1x64xf32> to vector<8x64xf32>
    %28 = arith.addf %24, %27 : vector<8x64xf32>
    %29 = vector.extract_strided_slice %28 {offsets = [0, 0], sizes = [8, 32], strides = [1, 1]} : vector<8x64xf32> to vector<8x32xf32>
    %cst_15 = arith.constant 0.000000e+00 : f32
    %30 = vector.broadcast %cst_15 : f32 to vector<8x32xf32>
    %31 = arith.maximumf %29, %30 : vector<8x32xf32>
    %32 = vector.extract_strided_slice %28 {offsets = [0, 32], sizes = [8, 32], strides = [1, 1]} : vector<8x64xf32> to vector<8x32xf32>
    %33 = arith.negf %32 : vector<8x32xf32>
    %34 = math.exp %33 : vector<8x32xf32>
    %cst_16 = arith.constant 1.000000e+00 : f32
    %35 = vector.broadcast %cst_16 : f32 to vector<8x32xf32>
    %36 = arith.addf %35, %34 : vector<8x32xf32>
    %37 = arith.divf %35, %36 : vector<8x32xf32>
    %38 = arith.subf %31, %20 : vector<8x32xf32>
    %39 = arith.mulf %37, %38 : vector<8x32xf32>
    %40 = arith.addf %20, %39 : vector<8x32xf32>
    %41 = arith.truncf %40 : vector<8x32xf32> to vector<8x32xbf16>
    %c2 = arith.constant 2 : index
    %c0_17 = arith.constant 0 : index
    %c0_18 = arith.constant 0 : index
    %42 = vector.load %arg2[%c2, %c0_17, %c0_18] : memref<3x32x64xbf16, #tpu.memory_space<vmem>>, vector<1x32x64xbf16>
    %43 = vector.shape_cast %42 : vector<1x32x64xbf16> to vector<32x64xbf16>
    %cst_19 = arith.constant dense<0.000000e+00> : vector<8x64xf32>
    %44 = tpu.matmul %41, %43, %cst_19 {dimension_numbers = #tpu.dot_dimension_numbers<[1], [0], [0], [1], [0, 0, 1, 1], [], []>} : vector<8x32xbf16>, vector<32x64xbf16>, vector<8x64xf32> -> vector<8x64xf32>
    %c2_20 = arith.constant 2 : index
    %c0_21 = arith.constant 0 : index
    %c0_22 = arith.constant 0 : index
    %45 = vector.load %arg3[%c2_20, %c0_21, %c0_22] : memref<3x1x64xf32, #tpu.memory_space<vmem>>, vector<1x1x64xf32>
    %46 = vector.shape_cast %45 : vector<1x1x64xf32> to vector<1x64xf32>
    %47 = vector.broadcast %46 : vector<1x64xf32> to vector<8x64xf32>
    %48 = arith.addf %44, %47 : vector<8x64xf32>
    %49 = vector.extract_strided_slice %48 {offsets = [0, 0], sizes = [8, 32], strides = [1, 1]} : vector<8x64xf32> to vector<8x32xf32>
    %cst_23 = arith.constant 0.000000e+00 : f32
    %50 = vector.broadcast %cst_23 : f32 to vector<8x32xf32>
    %51 = arith.maximumf %49, %50 : vector<8x32xf32>
    %52 = vector.extract_strided_slice %48 {offsets = [0, 32], sizes = [8, 32], strides = [1, 1]} : vector<8x64xf32> to vector<8x32xf32>
    %53 = arith.negf %52 : vector<8x32xf32>
    %54 = math.exp %53 : vector<8x32xf32>
    %cst_24 = arith.constant 1.000000e+00 : f32
    %55 = vector.broadcast %cst_24 : f32 to vector<8x32xf32>
    %56 = arith.addf %55, %54 : vector<8x32xf32>
    %57 = arith.divf %55, %56 : vector<8x32xf32>
    %58 = arith.subf %51, %40 : vector<8x32xf32>
    %59 = arith.mulf %57, %58 : vector<8x32xf32>
    %60 = arith.addf %40, %59 : vector<8x32xf32>
    %c0_25 = arith.constant 0 : index
    %c0_26 = arith.constant 0 : index
    %61 = vector.load %arg4[%c0_25, %c0_26] : memref<8x32xf32, #tpu.memory_space<vmem>>, vector<8x32xf32>
    tpu.vector_store %arg4[%c0_25, %c0_26], %60 {strides = array<i32>} : memref<8x32xf32, #tpu.memory_space<vmem>>, vector<8x32xf32>,
    return
  }
  func.func @transform_0(%arg0: i32) -> (i32, i32) {
    %c0_i32 = arith.constant 0 : i32
    %c0_i32_0 = arith.constant 0 : i32
    %c0_i32_1 = arith.constant 0 : i32
    return %c0_i32, %c0_i32_0 : i32, i32
  }
  func.func @transform_1(%arg0: i32) -> (i32, i32, i32) {
    %c0_i32 = arith.constant 0 : i32
    %c0_i32_0 = arith.constant 0 : i32
    %c0_i32_1 = arith.constant 0 : i32
    %c0_i32_2 = arith.constant 0 : i32
    return %c0_i32, %c0_i32_0, %c0_i32_1 : i32, i32, i32
  }
  func.func @transform_2(%arg0: i32) -> (i32, i32, i32) {
    %c0_i32 = arith.constant 0 : i32
    %c0_i32_0 = arith.constant 0 : i32
    %c0_i32_1 = arith.constant 0 : i32
    %c0_i32_2 = arith.constant 0 : i32
    return %c0_i32, %c0_i32_0, %c0_i32_1 : i32, i32, i32
  }
  func.func @transform_3(%arg0: i32) -> (i32, i32) {
    %c0_i32 = arith.constant 0 : i32
    %c0_i32_0 = arith.constant 0 : i32
    %c0_i32_1 = arith.constant 0 : i32
    return %c0_i32, %c0_i32_0 : i32, i32
  }
}

</mosaic_0001>

<bundles_post_ra>
// kernel: tpu_custom_call.1
= control target key start
LH: loop header
LB: loop body
LE: loop exit
PB: predicated region body
PF: predicated region fallthrough
CT: control target
= control target key end

     0   :  { %8 = vsyncpa [#allocation3], 0  ;;  %s505_s0 = inlined_call_operand.hbm [shape: f32[8,32], index: 0, kind: input, shape index: {}]   ;;  %s506_s1 = inlined_call_operand.hbm [shape: bf16[3,32,64], index: 1, kind: input, shape index: {}]   ;;  %s507_s2 = inlined_call_operand.hbm [shape: f32[3,1,64], index: 2, kind: input, shape index: {}]   ;;  %s508_s3 = inlined_call_operand.hbm [shape: f32[8,32], index: 3, kind: output, shape index: {}]  }
   0x1   :  { %9 = vsyncpa [#allocation6], 0  ;;  %s26_s14 = sshll.u32 %s506_s1, 4  ;;  %s27_s14 = int_to_ptr.hbm [resolvable:$true] %s26_s14 }
   0x2   :  { %10 = vsyncpa [#allocation4], 0  ;;  %s453_s15 = smov [#allocation5]   ;;  %s16_s19 = sshll.u32 %s505_s0, 4  ;;  %s17_s19 = int_to_ptr.hbm [resolvable:$true] %s16_s19 }
   0x3   :  { %s28_s16 = sshll.u32 %s453_s15, 4  ;;  %s454_s20 = smov 64   ;;  %s29_s16 = int_to_ptr.vmem [resolvable:$true] %s28_s16 }
   0x4   :  { %s455_s21 = smov 4   ;;  %s456_s22 = smov [#allocation2]  }
   0x5   :  { %34 = dma.hbm_to_vmem [thread:$0]  %s27_s14, 768, %s29_s16, [#allocation6], %s454_s20, %s454_s20, %s455_s21  }
   0x6   :  { %s18_s23 = sshll.u32 %s456_s22, 4  ;;  %s39_s26 = sshll.u32 %s507_s2, 4  ;;  %s19_s23 = int_to_ptr.vmem [resolvable:$true] %s18_s23  ;;  %s40_s26 = int_to_ptr.hbm [resolvable:$true] %s39_s26 }
   0x7   :  { %21 = dma.hbm_to_vmem [thread:$0]  %s17_s19, 128, %s19_s23, [#allocation3]  }
   0x8   :  { %s457_s1 = smov [#allocation7]   ;;  %s458_s28 = smov 16  }
   0x9   :  { %s41_s27 = sshll.u32 %s457_s1, 4  ;;  %s459_s29 = smov 1   ;;  %s42_s27 = int_to_ptr.vmem [resolvable:$true] %s41_s27 }
   0xa   :  { %47 = dma.hbm_to_vmem [thread:$0]  %s40_s26, 48, %s42_s27, [#allocation6], %s458_s28, %s458_s28, %s459_s29  }
   0xb   :  { %447 = dma.done.wait [#allocation3], 128  }
   0xc   :  { %448 = vsyncadd [#allocation3], 4294967168 }
   0xd   :  { %449 = dma.done.wait [#allocation6], 816  }
   0xe   :  { %450 = vsyncadd [#allocation6], 4294966480  ;;  %v321_v0 = vld [vmem:[#allocation5 + $0x8] sm:$0xff]  ;;  %v320_v1 = vld [vmem:[#allocation5] sm:$0xff]  ;;  %vm83_vm0 = vcmask 261120   ;;  %s460_s0 = smov 32  }
   0xf   :  { %93 = vmatpush.bf16.msra.mxu0 %v321_v0  ;;  %v61_v2 = vld [vmem:[#allocation2] sm:$0xff]  ;;  %v336_v4 = vld [vmem:[#allocation7] ss:$0 sm:$0xff]  ;;  %s461_s2 = smov 96   ;;  %v337_v30 = vld [vmem:[#allocation7 + $0x1] ss:$0 sm:$0xff] }
  0x10   :  { %v62_v3 = vpack.c.bf16 %v61_v2, %v61_v2  ;;  %v323_v13 = vld [vmem:[#allocation5 + $0x18] sm:$0xff]  ;;  %v322_v26 = vld [vmem:[#allocation5 + $0x10] sm:$0xff]  ;;  %v325_v39 = vld [vmem:[#allocation5 + $0x28] sm:$0xff]  ;;  %s462_s30 = smov [#allocation8]   ;;  %s279_s7 = sshll.u32 %s508_s3, 4  ;;  %s280_s7 = int_to_ptr.hbm [resolvable:$true] %s279_s7 }
  0x11   :  { %163 = vmatpush.bf16.msra.mxu1 %v323_v13  ;;  %233 = vmatpush.bf16.msra.mxu2 %v325_v39  ;;  %v324_v52 = vld [vmem:[#allocation5 + $0x20] sm:$0xff]  ;;  %v338_v56 = vld [vmem:[#allocation7 + $0x2] ss:$0 sm:$0xff]  ;;  %s277_s4 = sshll.u32 %s462_s30, 4  ;;  %s278_s4 = int_to_ptr.vmem [resolvable:$true] %s277_s4 }
  0x13   :  { %94 = vmatpush.bf16.msra.mxu0 %v320_v1 }
  0x15   :  { %164 = vmatpush.bf16.msra.mxu1 %v322_v26  ;;  %234 = vmatpush.bf16.msra.mxu2 %v324_v52 }
  0x16   :  { %298 = vmatmul.msk.bf16.vlgmr.msra.gmra.mxu0 %vm83_vm0, %v62_v3 }
  0x93   :  { %v96_v5 = vpop.f32.mrf.mxu0 }
  0x94   :  { %v97_v6 = vadd.f32 %v336_v4, %v96_v5 }
  0x96   :  { %v100_v7 = vmax.f32 %v97_v6, 0.0  ;;  %v299_v10 = vmul.f32 -1.442695, %v97_v6 }
  0x98   :  { %v120_v8 = vsub.f32 %v100_v7, %v61_v2  ;;  %339 = vpow2.f32 %v299_v10 }
  0x9a   :  { %122 = vrot.lane.b32.xlu0 %v120_v8, %s460_s0 }
  0x9b   :  { %v98_v9 = vpop.f32.mrf.mxu0 }
  0x9e   :  { %v340_v11 = vpop.eup %339 }
  0x9f   :  { %v104_v12 = vadd.f32 1.0, %v340_v11 }
  0xa1   :  { %341 = vrcp.f32 %v104_v12  ;;  %v116_v19 = vand.u32 2147483648, %v104_v12  ;;  %vm110_vm2 = vweird.f32 %v104_v12  ;;  %v114_v20 = vand.u32 2147483647, %v104_v12 }
  0xa3   :  { %v117_v22 = vor.u32 1.1754944e-38, %v116_v19  ;;  %vm115_vm4 = vcmp.eq.f32.partialorder %v114_v20, 8.507059e+37 }
  0xa7   :  { %v342_v14 = vpop.eup %341 }
  0xa8   :  { %v106_v15 = vmul.f32 %v342_v14, %v104_v12  ;;  %vm111_vm1 = vweird.f32 %v342_v14 }
  0xa9   :  { %vm112_vm3 = vmor %vm110_vm2, %vm111_vm1 }
  0xaa   :  { %v107_v16 = vsub.f32 1.0, %v106_v15 }
  0xac   :  { %v108_v17 = vmul.f32 %v342_v14, %v107_v16 }
  0xae   :  { %v109_v18 = vadd.f32 %v342_v14, %v108_v17 }
  0xb0   :  { %v113_v21 = vsel %vm112_vm3, %v342_v14, %v109_v18 }
  0xb1   :  { %v118_v23 = vsel %vm115_vm4, %v117_v22, %v113_v21 }
 0x10c   :  { %v123_v24 = vpop.permute.xlu0 %122 }
 0x10d   :  { %v125_v25 = vmul.f32 %v123_v24, %v118_v23 }
 0x10f   :  { %127 = vrot.lane.b32.xlu0 %v125_v25, %s461_s2 }
 0x181   :  { %v128_v27 = vpop.permute.xlu0 %127 }
 0x182   :  { %v130_v28 = vadd.f32 %v128_v27, %v61_v2 }
 0x184   :  { %v131_v29 = vpack.c.bf16 %v130_v28, %v130_v28 }
 0x186   :  { %308 = vmatmul.msk.bf16.vlgmr.msra.gmra.mxu1 %vm83_vm0, %v131_v29 }
 0x203   :  { %v166_v31 = vpop.f32.mrf.mxu1 }
 0x204   :  { %v167_v32 = vadd.f32 %v337_v30, %v166_v31 }
 0x206   :  { %v170_v33 = vmax.f32 %v167_v32, 0.0  ;;  %v309_v36 = vmul.f32 -1.442695, %v167_v32 }
 0x208   :  { %v190_v34 = vsub.f32 %v170_v33, %v130_v28  ;;  %343 = vpow2.f32 %v309_v36 }
 0x20a   :  { %192 = vrot.lane.b32.xlu1 %v190_v34, %s460_s0 }
 0x20b   :  { %v168_v35 = vpop.f32.mrf.mxu1 }
 0x20e   :  { %v344_v37 = vpop.eup %343 }
 0x20f   :  { %v174_v38 = vadd.f32 1.0, %v344_v37 }
 0x211   :  { %345 = vrcp.f32 %v174_v38  ;;  %v186_v45 = vand.u32 2147483648, %v174_v38  ;;  %vm180_vm6 = vweird.f32 %v174_v38  ;;  %v184_v46 = vand.u32 2147483647, %v174_v38 }
 0x213   :  { %v187_v48 = vor.u32 1.1754944e-38, %v186_v45  ;;  %vm185_vm8 = vcmp.eq.f32.partialorder %v184_v46, 8.507059e+37 }
 0x217   :  { %v346_v40 = vpop.eup %345 }
 0x218   :  { %v176_v41 = vmul.f32 %v346_v40, %v174_v38  ;;  %vm181_vm5 = vweird.f32 %v346_v40 }
 0x219   :  { %vm182_vm7 = vmor %vm180_vm6, %vm181_vm5 }
 0x21a   :  { %v177_v42 = vsub.f32 1.0, %v176_v41 }
 0x21c   :  { %v178_v43 = vmul.f32 %v346_v40, %v177_v42 }
 0x21e   :  { %v179_v44 = vadd.f32 %v346_v40, %v178_v43 }
 0x220   :  { %v183_v47 = vsel %vm182_vm7, %v346_v40, %v179_v44 }
 0x221   :  { %v188_v49 = vsel %vm185_vm8, %v187_v48, %v183_v47 }
 0x27c   :  { %v193_v50 = vpop.permute.xlu1 %192 }
 0x27d   :  { %v195_v51 = vmul.f32 %v193_v50, %v188_v49 }
 0x27f   :  { %197 = vrot.lane.b32.xlu1 %v195_v51, %s461_s2 }
 0x2f1   :  { %v198_v53 = vpop.permute.xlu1 %197 }
 0x2f2   :  { %v200_v54 = vadd.f32 %v198_v53, %v130_v28 }
 0x2f4   :  { %v201_v55 = vpack.c.bf16 %v200_v54, %v200_v54 }
 0x2f6   :  { %318 = vmatmul.msk.bf16.vlgmr.msra.gmra.mxu2 %vm83_vm0, %v201_v55 }
 0x379   :  { %v236_v57 = vpop.f32.mrf.mxu2 }
 0x37a   :  { %v237_v58 = vadd.f32 %v338_v56, %v236_v57 }
 0x37c   :  { %v240_v59 = vmax.f32 %v237_v58, 0.0  ;;  %v319_v62 = vmul.f32 -1.442695, %v237_v58 }
 0x37e   :  { %v260_v60 = vsub.f32 %v240_v59, %v200_v54  ;;  %347 = vpow2.f32 %v319_v62 }
 0x380   :  { %262 = vrot.lane.b32.xlu2 %v260_v60, %s460_s0 }
 0x381   :  { %v238_v61 = vpop.f32.mrf.mxu2 }
 0x384   :  { %v348_v63 = vpop.eup %347 }
 0x385   :  { %v244_v0 = vadd.f32 1.0, %v348_v63 }
 0x387   :  { %349 = vrcp.f32 %v244_v0  ;;  %v256_v6 = vand.u32 2147483648, %v244_v0  ;;  %vm250_vm10 = vweird.f32 %v244_v0  ;;  %v254_v7 = vand.u32 2147483647, %v244_v0 }
 0x389   :  { %v257_v9 = vor.u32 1.1754944e-38, %v256_v6  ;;  %vm255_vm12 = vcmp.eq.f32.partialorder %v254_v7, 8.507059e+37 }
 0x38d   :  { %v350_v1 = vpop.eup %349 }
 0x38e   :  { %v246_v2 = vmul.f32 %v350_v1, %v244_v0  ;;  %vm251_vm9 = vweird.f32 %v350_v1 }
 0x38f   :  { %vm252_vm11 = vmor %vm250_vm10, %vm251_vm9 }
 0x390   :  { %v247_v3 = vsub.f32 1.0, %v246_v2 }
 0x392   :  { %v248_v4 = vmul.f32 %v350_v1, %v247_v3 }
 0x394   :  { %v249_v5 = vadd.f32 %v350_v1, %v248_v4 }
 0x396   :  { %v253_v8 = vsel %vm252_vm11, %v350_v1, %v249_v5 }
 0x397   :  { %v258_v10 = vsel %vm255_vm12, %v257_v9, %v253_v8 }
 0x3da   :  { %v263_v11 = vpop.permute.xlu2 %262 }
 0x3db   :  { %v265_v12 = vmul.f32 %v263_v11, %v258_v10 }
 0x3dd   :  { %267 = vrot.lane.b32.xlu2 %v265_v12, %s461_s2 }
 0x437   :  { %v268_v13 = vpop.permute.xlu2 %267 }
 0x438   :  { %v270_v14 = vadd.f32 %v268_v13, %v200_v54 }
 0x43a   :  { %271 = vst.msk [vmem:[#allocation8] sm:$0xff] %vm83_vm0, %v270_v14 }
 0x43b   :  { %282 = dma.vmem_to_hbm [thread:$0]  %s278_s4, 128, %s280_s7, [#allocation4]  }
 0x43c   :  { %451 = dma.done.wait [#allocation4], 128  }
 0x43d   :  { %452 = vsyncadd [#allocation4], 4294967168 }
 0x43e   :  { %287 = vsyncpa [#allocation3], 1 }
 0x43f   :  { %288 = vsyncpa [#allocation6], 1 }
 0x440   :  { %289 = vsyncpa [#allocation4], 1 }

</bundles_post_ra>
